<compile_context>
chip_gen: v5e
topology: v5e:2x2
jax: 0.10.0
libtpu: 0.0.40
codegen_flags: <defaults>
</compile_context>

<pallas_src>
import functools

import jax
import jax.numpy as jnp
from jax.experimental import pallas as pl
from jax.experimental.pallas import tpu as pltpu


def _round_up(v, m):
    return (v + m - 1) // m * m


def _chip_vmem_capacity_bytes():
    """Physical VMEM per TensorCore; conservative fallback if the query fails."""
    try:
        info = pltpu.get_tpu_info()
        cap = getattr(info, "vmem_capacity_bytes", None)
        if cap:
            return int(cap)
    except Exception:
        pass
    return 64 * 2 ** 20  # v7x-sized conservative fallback


def _masks(c0, width, *, b, s, L1, N):
    """Validity masks for the batch-folded (lane = batch*length) layout.

    Built in-kernel from iota.  Invalid conv1 columns are the b static
    intervals [m*s + L1, (m+1)*s) plus the lane padding [N, NW); only integer
    compares are used (no vector div/mod).
    """
    col = c0 + jax.lax.broadcasted_iota(jnp.int32, (1, width), 1)
    valid = col < N
    m1 = valid
    for m in range(b):
        m1 = jnp.logical_and(
            m1,
            jnp.logical_not(jnp.logical_and(col >= m * s + L1, col < (m + 1) * s)))
    return m1.astype(jnp.float32), valid.astype(jnp.float32)


def smoother_kernel(x_ref, w1_ref, w2_ref, g1_ref, b1_ref, bias2_ref,
                    g2_ref, b2_ref, o_ref, apad_ref, *,
                    b, s, L1, N, P8, K, PADL, chunks, n1, n2, eps):
    """conv1 -> bn1 -> relu -> conv_transpose -> bn2, batch folded into lanes.

    Three chunked sweeps over the lane axis:
      1) conv1 per chunk (one fused im2col dot), raw h1 -> scratch, bn1 stats.
      2) bn1 apply + relu + mask in place, conv2 (one fused dot) + bias,
         bn2 stats, raw h2 -> output buffer.
      3) bn2 apply in place on the output buffer (lane-dense stores).
    """
    act_dtype = apad_ref.dtype

    # Zero the activation scratch once: provides the transpose-conv's left zero
    # padding and keeps never-written pad columns at zero.
    apad_ref[...] = jnp.zeros_like(apad_ref)

    # ---- pass 1: conv1 per chunk + bn1 stats (masked one-pass sums) ----
    sum1 = jnp.zeros((P8, 1), jnp.float32)
    sq1 = jnp.zeros((P8, 1), jnp.float32)
    for (c0, w) in chunks:
        slab = jnp.concatenate(
            [x_ref[:, c0 + k: c0 + k + w] for k in range(K)], axis=0)
        h1c = jnp.dot(w1_ref[...], slab, preferred_element_type=jnp.float32)
        m1f, _ = _masks(c0, w, b=b, s=s, L1=L1, N=N)
        h1m = h1c * m1f
        sum1 = sum1 + jnp.sum(h1m, axis=1, keepdims=True)
        sq1 = sq1 + jnp.sum(h1m * h1c, axis=1, keepdims=True)
        apad_ref[:, PADL + c0: PADL + c0 + w] = h1c.astype(act_dtype)

    mean1 = sum1 * (1.0 / n1)
    var1 = jnp.maximum(sq1 * (1.0 / n1) - mean1 * mean1, 0.0)  # clamp (review)
    sc1 = g1_ref[...] * jax.lax.rsqrt(var1 + eps)
    sh1 = b1_ref[...] - mean1 * sc1

    # ---- pass 2: bn1 apply + relu + mask (in place), conv2 + bias, bn2 stats ----
    sum2 = jnp.zeros((2, 1), jnp.float32)
    sq2 = jnp.zeros((2, 1), jnp.float32)
    for (c0, w) in chunks:
        m1f, m2f = _masks(c0, w, b=b, s=s, L1=L1, N=N)
        h1c = apad_ref[:, PADL + c0: PADL + c0 + w].astype(jnp.float32)
        a = jnp.maximum(h1c * sc1 + sh1, 0.0) * m1f
        apad_ref[:, PADL + c0: PADL + c0 + w] = a.astype(act_dtype)
        # Transpose-conv taps only look LEFT of the output column, so previously
        # processed chunks (and the zero left pad) are already final.
        base = PADL + c0 - (K - 1)
        slab2 = jnp.concatenate(
            [apad_ref[:, base + k: base + k + w] for k in range(K)], axis=0)
        h2c = jnp.dot(w2_ref[...], slab2, preferred_element_type=jnp.float32)
        h2c = h2c + bias2_ref[...]
        h2m = h2c * m2f
        sum2 = sum2 + jnp.sum(h2m, axis=1, keepdims=True)
        sq2 = sq2 + jnp.sum(h2m * h2c, axis=1, keepdims=True)
        o_ref[:, c0: c0 + w] = h2c

    mean2 = sum2 * (1.0 / n2)
    var2 = jnp.maximum(sq2 * (1.0 / n2) - mean2 * mean2, 0.0)
    sc2 = g2_ref[...] * jax.lax.rsqrt(var2 + eps)
    sh2 = b2_ref[...] - mean2 * sc2

    # ---- pass 3: bn2 apply, lane-aligned in-place stores ----
    for (c0, w) in chunks:
        o_ref[:, c0: c0 + w] = o_ref[:, c0: c0 + w] * sc2 + sh2


def ancestry_smoother_forward(x, pos, params, eps=1e-5,
                              mxu_dtype=jnp.float32, chunk_lanes=None):
    """Glue (pad / concat / flatten / weight re-layout) + fused Pallas kernel.

    mxu_dtype: operand dtype for the MXU dots and the activation scratch.
      jnp.bfloat16 halves slab/scratch bytes and doubles MXU rate on v6e/v7x;
      accumulation and BN math stay f32 either way.  Default f32 (exact check).
    """
    b, l, s = x.shape
    plen = pos.shape[2]
    POS = jnp.pad(pos, ((0, 0), (0, 0), (0, (-plen) % s))).reshape(b, 1, s)
    x_cat = jnp.concatenate([x, POS], axis=1).astype(jnp.float32)    # (b, C0, s)

    w1 = params["w1"].astype(jnp.float32)       # (P, C0, K)
    w2 = params["w2"].astype(jnp.float32)       # (P, 2, K)
    P, C0, K = w1.shape
    L1 = s - K + 1
    N = b * s
    NW = _round_up(N, 128)                      # lane-dense working width
    C0p = _round_up(C0, 8)                      # sublane-aligned channels
    P8 = _round_up(P, 8)
    PADL = _round_up(K - 1, 128)                # lane-aligned left zero pad
    XW = _round_up(NW + K - 1, 128)             # input width incl. conv1 reach
    esz = jnp.dtype(mxu_dtype).itemsize

    # Lane-chunk width: bound the per-chunk im2col slabs to a few MiB so the
    # kernel scales to kernel_size=100 / long sequences without blowing VMEM.
    if chunk_lanes is None:
        slab_budget = 4 * 2 ** 20
        per_lane = esz * K * (C0p + P8) + 4 * 6 * max(P8, 8)
        chunk_lanes = max(128, min(2048, (slab_budget // per_lane) // 128 * 128))
    chunks = []
    c = 0
    while c < NW:
        w = min(chunk_lanes, NW - c)
        chunks.append((c, w))
        c += w
    chunks = tuple(chunks)

    # Flattened (channels, batch*length) input, channel- and lane-padded.
    x_flat = jnp.transpose(x_cat, (1, 0, 2)).reshape(C0, N)
    x_in = jnp.zeros((C0p, XW), mxu_dtype).at[:C0, :N].set(x_flat.astype(mxu_dtype))

    # conv1 weight as one fused matrix:  W1[p, k*C0p + c] = w1[p, c, k]
    w1p = jnp.zeros((P8, C0p, K), jnp.float32).at[:P, :C0, :].set(w1)
    W1 = jnp.transpose(w1p, (0, 2, 1)).reshape(P8, K * C0p).astype(mxu_dtype)

    # conv2 (transpose conv) weight, tap-flipped, as one fused matrix:
    #   W2[o, k*P8 + p] = w2[p, o, K-1-k]
    w2f = w2[:, :, ::-1]
    w2p = jnp.zeros((P8, 2, K), jnp.float32).at[:P, :, :].set(w2f)
    W2 = jnp.transpose(w2p, (1, 2, 0)).reshape(2, K * P8).astype(mxu_dtype)

    gamma1 = jnp.zeros((P8, 1), jnp.float32).at[:P, 0].set(
        params["gamma1"].astype(jnp.float32))
    beta1 = jnp.zeros((P8, 1), jnp.float32).at[:P, 0].set(
        params["beta1"].astype(jnp.float32))
    bias2 = params["bias2"].reshape(2, 1).astype(jnp.float32)
    gamma2 = params["gamma2"].reshape(2, 1).astype(jnp.float32)
    beta2 = params["beta2"].reshape(2, 1).astype(jnp.float32)

    kernel = functools.partial(
        smoother_kernel, b=b, s=s, L1=L1, N=N, P8=P8, K=K, PADL=PADL,
        chunks=chunks, n1=float(b * L1), n2=float(b * s), eps=eps)

    # Honest VMEM peak (persistent buffers + per-chunk transients), chip-aware cap.
    max_chunk = max(w for _, w in chunks)
    persistent = (esz * C0p * XW                    # x_in
                  + esz * P8 * (PADL + NW)          # activation scratch
                  + 4 * 2 * NW                      # output buffer
                  + esz * (P8 * K * C0p + 2 * K * P8)   # fused weights
                  + 4 * 16 * max(P8, 8))            # small params / stats
    transient = max_chunk * (esz * K * (C0p + P8) + 4 * 6 * max(P8, 8))
    cap = max(32 * 2 ** 20, _chip_vmem_capacity_bytes() - 16 * 2 ** 20)
    vmem_limit = int(min(cap, max(16 * 2 ** 20, 2 * (persistent + transient))))

    out_flat = pl.pallas_call(
        kernel,
        out_shape=jax.ShapeDtypeStruct((2, NW), jnp.float32),
        in_specs=[pl.BlockSpec(memory_space=pltpu.MemorySpace.VMEM)] * 8,
        out_specs=pl.BlockSpec(memory_space=pltpu.MemorySpace.VMEM),
        scratch_shapes=[pltpu.VMEM((P8, PADL + NW), mxu_dtype)],
        compiler_params=pltpu.CompilerParams(vmem_limit_bytes=vmem_limit),
    )(x_in, W1, W2, gamma1, beta1, bias2, gamma2, beta2)

    return out_flat[:, :N].reshape(2, b, s).transpose(1, 0, 2)


def reference_forward(x, pos, params, eps=1e-5):
    """Pure-JAX reference mirroring the PyTorch forward (training-mode BN)."""
    b, l, s = x.shape
    plen = pos.shape[2]
    POS = jnp.pad(pos, ((0, 0), (0, 0), (0, (-plen) % s))).reshape(b, 1, s)
    out = jnp.concatenate([x, POS], axis=1)

    h1 = jax.lax.conv_general_dilated(out, params["w1"], (1,), 'VALID',
                                      dimension_numbers=('NCH', 'OIH', 'NCH'))
    m1 = jnp.mean(h1, axis=(0, 2), keepdims=True)
    v1 = jnp.mean((h1 - m1) ** 2, axis=(0, 2), keepdims=True)
    h1 = (h1 - m1) / jnp.sqrt(v1 + eps) * params["gamma1"][None, :, None] \
         + params["beta1"][None, :, None]
    a1 = jnp.maximum(h1, 0.0)

    w2 = params["w2"]
    K = w2.shape[2]
    w2c = jnp.transpose(w2[:, :, ::-1], (1, 0, 2))                # (2, P, K) OIH
    h2 = jax.lax.conv_general_dilated(a1, w2c, (1,), [(K - 1, K - 1)],
                                      dimension_numbers=('NCH', 'OIH', 'NCH'))
    h2 = h2 + params["bias2"][None, :, None]
    m2 = jnp.mean(h2, axis=(0, 2), keepdims=True)
    v2 = jnp.mean((h2 - m2) ** 2, axis=(0, 2), keepdims=True)
    return (h2 - m2) / jnp.sqrt(v2 + eps) * params["gamma2"][None, :, None] \
           + params["beta2"][None, :, None]


if __name__ == "__main__":
    key = jax.random.PRNGKey(0)
    B, L, S = 2, 4, 64          # x: (batch, channels, length)
    IN_PLANES = L + 1           # after concatenating the POS channel
    PLANES = 8
    K = 8                       # small stand-in for kernel_size=100
    POS_LEN = 30                # pos length (< S, exercises the pad/reshape path)

    ks = jax.random.split(key, 8)
    x = jax.random.normal(ks[0], (B, L, S), jnp.float32)
    pos = jax.random.normal(ks[1], (B, 1, POS_LEN), jnp.float32)

    params = {
        "w1": 0.1 * jax.random.normal(ks[2], (PLANES, IN_PLANES, K), jnp.float32),
        "gamma1": 1.0 + 0.1 * jax.random.normal(ks[3], (PLANES,), jnp.float32),
        "beta1": 0.1 * jax.random.normal(ks[4], (PLANES,), jnp.float32),
        "w2": 0.1 * jax.random.normal(ks[5], (PLANES, 2, K), jnp.float32),
        "bias2": 0.1 * jax.random.normal(ks[6], (2,), jnp.float32),
        "gamma2": 1.0 + 0.1 * jax.random.normal(ks[7], (2,), jnp.float32),
        "beta2": jnp.zeros((2,), jnp.float32),
    }

    out = jax.block_until_ready(ancestry_smoother_forward(x, pos, params))
    ref = jax.block_until_ready(reference_forward(x, pos, params))

    assert out.shape == (B, 2, S), out.shape
    max_err = float(jnp.max(jnp.abs(out - ref)))
    assert max_err < 1e-3, f"max abs error {max_err}"
    print("KERNEL_OK")
</pallas_src>

<mosaic_0001>
module attributes {stable_mosaic.version = 11 : i64} {
  func.func @smoother_kernel(%arg0: memref<8x256xf32, #tpu.memory_space<vmem>>, %arg1: memref<8x64xf32, #tpu.memory_space<vmem>>, %arg2: memref<2x64xf32, #tpu.memory_space<vmem>>, %arg3: memref<8x1xf32, #tpu.memory_space<vmem>>, %arg4: memref<8x1xf32, #tpu.memory_space<vmem>>, %arg5: memref<2x1xf32, #tpu.memory_space<vmem>>, %arg6: memref<2x1xf32, #tpu.memory_space<vmem>>, %arg7: memref<2x1xf32, #tpu.memory_space<vmem>>, %arg8: memref<2x128xf32, #tpu.memory_space<vmem>>, %arg9: memref<8x256xf32, #tpu.memory_space<vmem>>) attributes {dimension_semantics = [], scalar_prefetch = 0 : i64, scratch_operands = 1 : i64, tpu.core_type = #tpu.core_type<tc>} {
    %cst = arith.constant 0.000000e+00 : f32
    %0 = vector.broadcast %cst : f32 to vector<8x256xf32>
    %c0 = arith.constant 0 : index
    %c0_0 = arith.constant 0 : index
    %1 = vector.load %arg9[%c0, %c0_0] : memref<8x256xf32, #tpu.memory_space<vmem>>, vector<8x256xf32>
    tpu.vector_store %arg9[%c0, %c0_0], %0 {strides = array<i32>} : memref<8x256xf32, #tpu.memory_space<vmem>>, vector<8x256xf32>,
    %cst_1 = arith.constant 0.000000e+00 : f32
    %2 = vector.broadcast %cst_1 : f32 to vector<8x1xf32>
    %cst_2 = arith.constant 0.000000e+00 : f32
    %3 = vector.broadcast %cst_2 : f32 to vector<8x1xf32>
    %c0_3 = arith.constant 0 : index
    %c0_4 = arith.constant 0 : index
    %4 = vector.load %arg0[%c0_3, %c0_4] : memref<8x256xf32, #tpu.memory_space<vmem>>, vector<8x128xf32>
    %c0_5 = arith.constant 0 : index
    %c1 = arith.constant 1 : index
    %5 = vector.load %arg0[%c0_5, %c1] : memref<8x256xf32, #tpu.memory_space<vmem>>, vector<8x128xf32>
    %c0_6 = arith.constant 0 : index
    %c2 = arith.constant 2 : index
    %6 = vector.load %arg0[%c0_6, %c2] : memref<8x256xf32, #tpu.memory_space<vmem>>, vector<8x128xf32>
    %c0_7 = arith.constant 0 : index
    %c3 = arith.constant 3 : index
    %7 = vector.load %arg0[%c0_7, %c3] : memref<8x256xf32, #tpu.memory_space<vmem>>, vector<8x128xf32>
    %c0_8 = arith.constant 0 : index
    %c4 = arith.constant 4 : index
    %8 = vector.load %arg0[%c0_8, %c4] : memref<8x256xf32, #tpu.memory_space<vmem>>, vector<8x128xf32>
    %c0_9 = arith.constant 0 : index
    %c5 = arith.constant 5 : index
    %9 = vector.load %arg0[%c0_9, %c5] : memref<8x256xf32, #tpu.memory_space<vmem>>, vector<8x128xf32>
    %c0_10 = arith.constant 0 : index
    %c6 = arith.constant 6 : index
    %10 = vector.load %arg0[%c0_10, %c6] : memref<8x256xf32, #tpu.memory_space<vmem>>, vector<8x128xf32>
    %c0_11 = arith.constant 0 : index
    %c7 = arith.constant 7 : index
    %11 = vector.load %arg0[%c0_11, %c7] : memref<8x256xf32, #tpu.memory_space<vmem>>, vector<8x128xf32>
    %12 = tpu.concatenate %4, %5, %6, %7, %8, %9, %10, %11 in 0 : vector<8x128xf32>, vector<8x128xf32>, vector<8x128xf32>, vector<8x128xf32>, vector<8x128xf32>, vector<8x128xf32>, vector<8x128xf32>, vector<8x128xf32> -> vector<64x128xf32>
    %c0_12 = arith.constant 0 : index
    %c0_13 = arith.constant 0 : index
    %13 = vector.load %arg1[%c0_12, %c0_13] : memref<8x64xf32, #tpu.memory_space<vmem>>, vector<8x64xf32>
    %cst_14 = arith.constant dense<0.000000e+00> : vector<8x128xf32>
    %14 = tpu.matmul %13, %12, %cst_14 {dimension_numbers = #tpu.dot_dimension_numbers<[1], [0], [0], [1], [0, 0, 1, 1], [], []>} : vector<8x64xf32>, vector<64x128xf32>, vector<8x128xf32> -> vector<8x128xf32>
    %15 = tpu.iota {dimensions = array<i32: 1>} : vector<1x128xi32>
    %c0_i32 = arith.constant 0 : i32
    %16 = vector.broadcast %c0_i32 : i32 to vector<1x128xi32>
    %17 = arith.addi %16, %15 : vector<1x128xi32>
    %c128_i32 = arith.constant 128 : i32
    %18 = vector.broadcast %c128_i32 : i32 to vector<1x128xi32>
    %19 = arith.cmpi slt, %17, %18 : vector<1x128xi32>
    %c57_i32 = arith.constant 57 : i32
    %20 = vector.broadcast %c57_i32 : i32 to vector<1x128xi32>
    %21 = arith.cmpi sge, %17, %20 : vector<1x128xi32>
    %c64_i32 = arith.constant 64 : i32
    %22 = vector.broadcast %c64_i32 : i32 to vector<1x128xi32>
    %23 = arith.cmpi slt, %17, %22 : vector<1x128xi32>
    %24 = arith.andi %21, %23 : vector<1x128xi1>
    %cst_15 = arith.constant dense<true> : vector<1x128xi1>
    %25 = arith.xori %24, %cst_15 : vector<1x128xi1>
    %26 = arith.andi %19, %25 : vector<1x128xi1>
    %c121_i32 = arith.constant 121 : i32
    %27 = vector.broadcast %c121_i32 : i32 to vector<1x128xi32>
    %28 = arith.cmpi sge, %17, %27 : vector<1x128xi32>
    %c128_i32_16 = arith.constant 128 : i32
    %29 = vector.broadcast %c128_i32_16 : i32 to vector<1x128xi32>
    %30 = arith.cmpi slt, %17, %29 : vector<1x128xi32>
    %31 = arith.andi %28, %30 : vector<1x128xi1>
    %cst_17 = arith.constant dense<true> : vector<1x128xi1>
    %32 = arith.xori %31, %cst_17 : vector<1x128xi1>
    %33 = arith.andi %26, %32 : vector<1x128xi1>
    %34 = arith.extui %33 : vector<1x128xi1> to vector<1x128xi32>
    %35 = arith.sitofp %34 : vector<1x128xi32> to vector<1x128xf32>
    %36 = vector.broadcast %35 : vector<1x128xf32> to vector<8x128xf32>
    %37 = arith.mulf %14, %36 : vector<8x128xf32>
    %cst_18 = arith.constant dense<0.000000e+00> : vector<8xf32>
    %38 = vector.multi_reduction <add>, %37, %cst_18 [1] : vector<8x128xf32> to vector<8xf32>
    %39 = vector.shape_cast %38 : vector<8xf32> to vector<8x1xf32>
    %40 = arith.addf %2, %39 : vector<8x1xf32>
    %41 = arith.mulf %37, %14 : vector<8x128xf32>
    %cst_19 = arith.constant dense<0.000000e+00> : vector<8xf32>
    %42 = vector.multi_reduction <add>, %41, %cst_19 [1] : vector<8x128xf32> to vector<8xf32>
    %43 = vector.shape_cast %42 : vector<8xf32> to vector<8x1xf32>
    %44 = arith.addf %3, %43 : vector<8x1xf32>
    %c0_20 = arith.constant 0 : index
    %c128 = arith.constant 128 : index
    %45 = vector.load %arg9[%c0_20, %c128] : memref<8x256xf32, #tpu.memory_space<vmem>>, vector<8x128xf32>
    tpu.vector_store %arg9[%c0_20, %c128], %14 {strides = array<i32>} : memref<8x256xf32, #tpu.memory_space<vmem>>, vector<8x128xf32>,
    %cst_21 = arith.constant 0.00877192988 : f32
    %46 = vector.broadcast %cst_21 : f32 to vector<8x1xf32>
    %47 = arith.mulf %40, %46 : vector<8x1xf32>
    %cst_22 = arith.constant 0.00877192988 : f32
    %48 = vector.broadcast %cst_22 : f32 to vector<8x1xf32>
    %49 = arith.mulf %44, %48 : vector<8x1xf32>
    %50 = arith.mulf %47, %47 : vector<8x1xf32>
    %51 = arith.subf %49, %50 : vector<8x1xf32>
    %cst_23 = arith.constant 0.000000e+00 : f32
    %52 = vector.broadcast %cst_23 : f32 to vector<8x1xf32>
    %53 = arith.maximumf %51, %52 : vector<8x1xf32>
    %c0_24 = arith.constant 0 : index
    %c0_25 = arith.constant 0 : index
    %54 = vector.load %arg3[%c0_24, %c0_25] : memref<8x1xf32, #tpu.memory_space<vmem>>, vector<8x1xf32>
    %cst_26 = arith.constant 9.99999974E-6 : f32
    %55 = vector.broadcast %cst_26 : f32 to vector<8x1xf32>
    %56 = arith.addf %53, %55 : vector<8x1xf32>
    %57 = math.rsqrt %56 : vector<8x1xf32>
    %58 = arith.mulf %54, %57 : vector<8x1xf32>
    %c0_27 = arith.constant 0 : index
    %c0_28 = arith.constant 0 : index
    %59 = vector.load %arg4[%c0_27, %c0_28] : memref<8x1xf32, #tpu.memory_space<vmem>>, vector<8x1xf32>
    %60 = arith.mulf %47, %58 : vector<8x1xf32>
    %61 = arith.subf %59, %60 : vector<8x1xf32>
    %cst_29 = arith.constant 0.000000e+00 : f32
    %62 = vector.broadcast %cst_29 : f32 to vector<2x1xf32>
    %cst_30 = arith.constant 0.000000e+00 : f32
    %63 = vector.broadcast %cst_30 : f32 to vector<2x1xf32>
    %64 = tpu.iota {dimensions = array<i32: 1>} : vector<1x128xi32>
    %c0_i32_31 = arith.constant 0 : i32
    %65 = vector.broadcast %c0_i32_31 : i32 to vector<1x128xi32>
    %66 = arith.addi %65, %64 : vector<1x128xi32>
    %c128_i32_32 = arith.constant 128 : i32
    %67 = vector.broadcast %c128_i32_32 : i32 to vector<1x128xi32>
    %68 = arith.cmpi slt, %66, %67 : vector<1x128xi32>
    %c57_i32_33 = arith.constant 57 : i32
    %69 = vector.broadcast %c57_i32_33 : i32 to vector<1x128xi32>
    %70 = arith.cmpi sge, %66, %69 : vector<1x128xi32>
    %c64_i32_34 = arith.constant 64 : i32
    %71 = vector.broadcast %c64_i32_34 : i32 to vector<1x128xi32>
    %72 = arith.cmpi slt, %66, %71 : vector<1x128xi32>
    %73 = arith.andi %70, %72 : vector<1x128xi1>
    %cst_35 = arith.constant dense<true> : vector<1x128xi1>
    %74 = arith.xori %73, %cst_35 : vector<1x128xi1>
    %75 = arith.andi %68, %74 : vector<1x128xi1>
    %c121_i32_36 = arith.constant 121 : i32
    %76 = vector.broadcast %c121_i32_36 : i32 to vector<1x128xi32>
    %77 = arith.cmpi sge, %66, %76 : vector<1x128xi32>
    %c128_i32_37 = arith.constant 128 : i32
    %78 = vector.broadcast %c128_i32_37 : i32 to vector<1x128xi32>
    %79 = arith.cmpi slt, %66, %78 : vector<1x128xi32>
    %80 = arith.andi %77, %79 : vector<1x128xi1>
    %cst_38 = arith.constant dense<true> : vector<1x128xi1>
    %81 = arith.xori %80, %cst_38 : vector<1x128xi1>
    %82 = arith.andi %75, %81 : vector<1x128xi1>
    %83 = arith.extui %82 : vector<1x128xi1> to vector<1x128xi32>
    %84 = arith.sitofp %83 : vector<1x128xi32> to vector<1x128xf32>
    %85 = arith.extui %68 : vector<1x128xi1> to vector<1x128xi32>
    %86 = arith.sitofp %85 : vector<1x128xi32> to vector<1x128xf32>
    %c0_39 = arith.constant 0 : index
    %c128_40 = arith.constant 128 : index
    %87 = vector.load %arg9[%c0_39, %c128_40] : memref<8x256xf32, #tpu.memory_space<vmem>>, vector<8x128xf32>
    %88 = vector.broadcast %58 : vector<8x1xf32> to vector<8x128xf32>
    %89 = arith.mulf %87, %88 : vector<8x128xf32>
    %90 = vector.broadcast %61 : vector<8x1xf32> to vector<8x128xf32>
    %91 = arith.addf %89, %90 : vector<8x128xf32>
    %cst_41 = arith.constant 0.000000e+00 : f32
    %92 = vector.broadcast %cst_41 : f32 to vector<8x128xf32>
    %93 = arith.maximumf %91, %92 : vector<8x128xf32>
    %94 = vector.broadcast %84 : vector<1x128xf32> to vector<8x128xf32>
    %95 = arith.mulf %93, %94 : vector<8x128xf32>
    %c0_42 = arith.constant 0 : index
    %c128_43 = arith.constant 128 : index
    %96 = vector.load %arg9[%c0_42, %c128_43] : memref<8x256xf32, #tpu.memory_space<vmem>>, vector<8x128xf32>
    tpu.vector_store %arg9[%c0_42, %c128_43], %95 {strides = array<i32>} : memref<8x256xf32, #tpu.memory_space<vmem>>, vector<8x128xf32>,
    %c0_44 = arith.constant 0 : index
    %c121 = arith.constant 121 : index
    %97 = vector.load %arg9[%c0_44, %c121] : memref<8x256xf32, #tpu.memory_space<vmem>>, vector<8x128xf32>
    %c0_45 = arith.constant 0 : index
    %c122 = arith.constant 122 : index
    %98 = vector.load %arg9[%c0_45, %c122] : memref<8x256xf32, #tpu.memory_space<vmem>>, vector<8x128xf32>
    %c0_46 = arith.constant 0 : index
    %c123 = arith.constant 123 : index
    %99 = vector.load %arg9[%c0_46, %c123] : memref<8x256xf32, #tpu.memory_space<vmem>>, vector<8x128xf32>
    %c0_47 = arith.constant 0 : index
    %c124 = arith.constant 124 : index
    %100 = vector.load %arg9[%c0_47, %c124] : memref<8x256xf32, #tpu.memory_space<vmem>>, vector<8x128xf32>
    %c0_48 = arith.constant 0 : index
    %c125 = arith.constant 125 : index
    %101 = vector.load %arg9[%c0_48, %c125] : memref<8x256xf32, #tpu.memory_space<vmem>>, vector<8x128xf32>
    %c0_49 = arith.constant 0 : index
    %c126 = arith.constant 126 : index
    %102 = vector.load %arg9[%c0_49, %c126] : memref<8x256xf32, #tpu.memory_space<vmem>>, vector<8x128xf32>
    %c0_50 = arith.constant 0 : index
    %c127 = arith.constant 127 : index
    %103 = vector.load %arg9[%c0_50, %c127] : memref<8x256xf32, #tpu.memory_space<vmem>>, vector<8x128xf32>
    %c0_51 = arith.constant 0 : index
    %c128_52 = arith.constant 128 : index
    %104 = vector.load %arg9[%c0_51, %c128_52] : memref<8x256xf32, #tpu.memory_space<vmem>>, vector<8x128xf32>
    %105 = tpu.concatenate %97, %98, %99, %100, %101, %102, %103, %104 in 0 : vector<8x128xf32>, vector<8x128xf32>, vector<8x128xf32>, vector<8x128xf32>, vector<8x128xf32>, vector<8x128xf32>, vector<8x128xf32>, vector<8x128xf32> -> vector<64x128xf32>
    %c0_53 = arith.constant 0 : index
    %c0_54 = arith.constant 0 : index
    %106 = vector.load %arg2[%c0_53, %c0_54] : memref<2x64xf32, #tpu.memory_space<vmem>>, vector<2x64xf32>
    %cst_55 = arith.constant dense<0.000000e+00> : vector<2x128xf32>
    %107 = tpu.matmul %106, %105, %cst_55 {dimension_numbers = #tpu.dot_dimension_numbers<[1], [0], [0], [1], [0, 0, 1, 1], [], []>} : vector<2x64xf32>, vector<64x128xf32>, vector<2x128xf32> -> vector<2x128xf32>
    %c0_56 = arith.constant 0 : index
    %c0_57 = arith.constant 0 : index
    %108 = vector.load %arg5[%c0_56, %c0_57] : memref<2x1xf32, #tpu.memory_space<vmem>>, vector<2x1xf32>
    %109 = vector.broadcast %108 : vector<2x1xf32> to vector<2x128xf32>
    %110 = arith.addf %107, %109 : vector<2x128xf32>
    %111 = vector.broadcast %86 : vector<1x128xf32> to vector<2x128xf32>
    %112 = arith.mulf %110, %111 : vector<2x128xf32>
    %cst_58 = arith.constant dense<0.000000e+00> : vector<2xf32>
    %113 = vector.multi_reduction <add>, %112, %cst_58 [1] : vector<2x128xf32> to vector<2xf32>
    %114 = vector.shape_cast %113 : vector<2xf32> to vector<2x1xf32>
    %115 = arith.addf %62, %114 : vector<2x1xf32>
    %116 = arith.mulf %112, %110 : vector<2x128xf32>
    %cst_59 = arith.constant dense<0.000000e+00> : vector<2xf32>
    %117 = vector.multi_reduction <add>, %116, %cst_59 [1] : vector<2x128xf32> to vector<2xf32>
    %118 = vector.shape_cast %117 : vector<2xf32> to vector<2x1xf32>
    %119 = arith.addf %63, %118 : vector<2x1xf32>
    %c0_60 = arith.constant 0 : index
    %c0_61 = arith.constant 0 : index
    %120 = vector.load %arg8[%c0_60, %c0_61] : memref<2x128xf32, #tpu.memory_space<vmem>>, vector<2x128xf32>
    tpu.vector_store %arg8[%c0_60, %c0_61], %110 {strides = array<i32>} : memref<2x128xf32, #tpu.memory_space<vmem>>, vector<2x128xf32>,
    %cst_62 = arith.constant 7.812500e-03 : f32
    %121 = vector.broadcast %cst_62 : f32 to vector<2x1xf32>
    %122 = arith.mulf %115, %121 : vector<2x1xf32>
    %cst_63 = arith.constant 7.812500e-03 : f32
    %123 = vector.broadcast %cst_63 : f32 to vector<2x1xf32>
    %124 = arith.mulf %119, %123 : vector<2x1xf32>
    %125 = arith.mulf %122, %122 : vector<2x1xf32>
    %126 = arith.subf %124, %125 : vector<2x1xf32>
    %cst_64 = arith.constant 0.000000e+00 : f32
    %127 = vector.broadcast %cst_64 : f32 to vector<2x1xf32>
    %128 = arith.maximumf %126, %127 : vector<2x1xf32>
    %c0_65 = arith.constant 0 : index
    %c0_66 = arith.constant 0 : index
    %129 = vector.load %arg6[%c0_65, %c0_66] : memref<2x1xf32, #tpu.memory_space<vmem>>, vector<2x1xf32>
    %cst_67 = arith.constant 9.99999974E-6 : f32
    %130 = vector.broadcast %cst_67 : f32 to vector<2x1xf32>
    %131 = arith.addf %128, %130 : vector<2x1xf32>
    %132 = math.rsqrt %131 : vector<2x1xf32>
    %133 = arith.mulf %129, %132 : vector<2x1xf32>
    %c0_68 = arith.constant 0 : index
    %c0_69 = arith.constant 0 : index
    %134 = vector.load %arg7[%c0_68, %c0_69] : memref<2x1xf32, #tpu.memory_space<vmem>>, vector<2x1xf32>
    %135 = arith.mulf %122, %133 : vector<2x1xf32>
    %136 = arith.subf %134, %135 : vector<2x1xf32>
    %c0_70 = arith.constant 0 : index
    %c0_71 = arith.constant 0 : index
    %137 = vector.load %arg8[%c0_70, %c0_71] : memref<2x128xf32, #tpu.memory_space<vmem>>, vector<2x128xf32>
    %138 = vector.broadcast %133 : vector<2x1xf32> to vector<2x128xf32>
    %139 = arith.mulf %137, %138 : vector<2x128xf32>
    %140 = vector.broadcast %136 : vector<2x1xf32> to vector<2x128xf32>
    %141 = arith.addf %139, %140 : vector<2x128xf32>
    %c0_72 = arith.constant 0 : index
    %c0_73 = arith.constant 0 : index
    %142 = vector.load %arg8[%c0_72, %c0_73] : memref<2x128xf32, #tpu.memory_space<vmem>>, vector<2x128xf32>
    tpu.vector_store %arg8[%c0_72, %c0_73], %141 {strides = array<i32>} : memref<2x128xf32, #tpu.memory_space<vmem>>, vector<2x128xf32>,
    return
  }
}

</mosaic_0001>

<bundles_post_ra>
// kernel: tpu_custom_call.1
= control target key start
LH: loop header
LB: loop body
LE: loop exit
PB: predicated region body
PF: predicated region fallthrough
CT: control target
= control target key end

     0   :  { %13 = vsyncpa [#allocation4], 0  ;;  %s659_s0 = inlined_call_operand.vmem [shape: f32[8,256], index: 0, kind: input, shape index: {}]   ;;  %s660_s1 = inlined_call_operand.hbm [shape: f32[8,64], index: 1, kind: input, shape index: {}]   ;;  %s661_s2 = inlined_call_operand.vmem [shape: f32[2,64], index: 2, kind: input, shape index: {}]   ;;  %s662_s3 = inlined_call_operand.vmem [shape: f32[8,1], index: 3, kind: input, shape index: {}]   ;;  %s663_s4 = inlined_call_operand.vmem [shape: f32[8,1], index: 4, kind: input, shape index: {}]   ;;  %s664_s5 = inlined_call_operand.vmem [shape: f32[2,1], index: 5, kind: input, shape index: {}]   ;;  %s665_s6 = inlined_call_operand.vmem [shape: f32[2,1], index: 6, kind: input, shape index: {}]   ;;  %s666_s7 = inlined_call_operand.vmem [shape: f32[2,1], index: 7, kind: input, shape index: {}]   ;;  %s667_s8 = inlined_call_operand.hbm [shape: f32[2,128], index: 8, kind: output, shape index: {}]  }
   0x1   :  { %14 = vsyncpa [#allocation5], 0  ;;  %s22_s29 = sshll.u32 %s660_s1, 4  ;;  %s536_s30 = smov [#allocation3]   ;;  %s23_s29 = int_to_ptr.hbm [resolvable:$true] %s22_s29 }
   0x2   :  { %s24_s9 = sshll.u32 %s536_s30, 4  ;;  %s25_s9 = int_to_ptr.vmem [resolvable:$true] %s24_s9 }
   0x3   :  { %27 = dma.hbm_to_vmem [thread:$0]  %s23_s29, 128, %s25_s9, [#allocation4]  }
   0x4   :  { %532 = dma.done.wait [#allocation4], 128  }
   0x5   :  { %533 = vsyncadd [#allocation4], 4294967168  ;;  %v47_v0 = vld [vmem:[%s659_s0] sm:$0xff]  ;;  %v48_v1 = vld [vmem:[%s659_s0 + $0x8] sm:$0xff]  ;;  %s537_s14 = smov 121   ;;  %s538_s1 = smov 123   ;;  %v125_v32 = vlaneseq }
   0x6   :  { %v379_v2 = vpack.i.bf16 %v48_v1, %v47_v0  ;;  %s539_s15 = smov 125   ;;  %s540_s16 = smov 122   ;;  %vm97_vm0 = vcmask 990208   ;;  %vm90_vm1 = vcmask 998400   ;;  %vm83_vm2 = vcmask 1006592   ;;  %v100_v31 = vld [vmem:[#allocation3] sm:$0xff] }
   0x7   :  { %s541_s17 = smov 124   ;;  %s542_s18 = smov 126   ;;  %vm76_vm3 = vcmask 1014784   ;;  %vm69_vm4 = vcmask 1022976   ;;  %vm62_vm5 = vcmask 1031168   ;;  %vm55_vm6 = vcmask 1039360  }
   0x8   :  { %380 = vrot.lane.b32.xlu0 %v379_v2, %s537_s14  ;;  %390 = vrot.lane.b32.xlu1 %v379_v2, %s538_s1  ;;  %s543_s0 = smov 127   ;;  %vm101_vm7 = vcmask 523264   ;;  %v126_v33 = vand.u32 127, %v125_v32  ;;  %vm544_vm12 = vmmov 1   ;;  %v545_v34 = vmov 0.0   ;;  %v153_v53 = vld [vmem:[%s662_s3] sm:$0xff] }
   0x9   :  { %400 = vrot.lane.b32.xlu2 %v379_v2, %s539_s15  ;;  %v546_v39 = vmov 0   ;;  %v166_v58 = vld [vmem:[%s663_s4] sm:$0xff]  ;;  %s547_s3 = smov 7   ;;  %s548_s28 = smov [#allocation6]  }
   0xa   :  { %vm128_vm8 = vcmp.ge.s32.totalorder %v126_v33, 57  ;;  %vm129_vm9 = vcmp.lt.s32.totalorder %v126_v33, 64  ;;  %vm133_vm11 = vcmp.ge.s32.totalorder %v126_v33, 121  ;;  %414 = vset.pattern.permute.xlu0 %v546_v39  ;;  %s351_s29 = sshll.u32 %s548_s28, 4  ;;  %s352_s29 = int_to_ptr.vmem [resolvable:$true] %s351_s29 }
   0xb   :  { %vm130_vm10 = vmand %vm128_vm8, %vm129_vm9 }
   0xc   :  { %vm131_vm13 = vmxor %vm130_vm10, %vm544_vm12 }
   0xd   :  { %vm135_vm14 = vmxor %vm133_vm11, %vm544_vm12 }
   0xe   :  { %vm136_vm15 = vmand %vm131_vm13, %vm135_vm14 }
   0xf   :  { %v364_v35 = vsel %vm136_vm15, 1.0, %v545_v34 }
  0x10   :  { %385 = vrot.lane.b32.xlu0 %v379_v2, %s540_s16  ;;  %395 = vrot.lane.b32.xlu1 %v379_v2, %s541_s17 }
  0x11   :  { %405 = vrot.lane.b32.xlu2 %v379_v2, %s542_s18 }
  0x18   :  { %410 = vrot.lane.b32.xlu0 %v379_v2, %s543_s0 }
  0x63   :  { %v401_v3 = vpop.permute.xlu2 %400 }
  0x64   :  { %v403_v19 = vunpack.i.h.bf16 %v401_v3  ;;  %v402_v20 = vunpack.i.l.bf16 %v401_v3 }
  0x66   :  { %v70_v28 = vsel %vm69_vm4, %v402_v20, %v403_v19 }
  0x6b   :  { %v406_v17 = vpop.permute.xlu2 %405 }
  0x6c   :  { %v408_v22 = vunpack.i.h.bf16 %v406_v17  ;;  %v407_v23 = vunpack.i.l.bf16 %v406_v17 }
  0x6e   :  { %v63_v29 = vsel %vm62_vm5, %v407_v23, %v408_v22 }
  0x7a   :  { %v381_v4 = vpop.permute.xlu0 %380  ;;  %v391_v5 = vpop.permute.xlu1 %390 }
  0x7b   :  { %v383_v6 = vunpack.i.h.bf16 %v381_v4  ;;  %v382_v7 = vunpack.i.l.bf16 %v381_v4  ;;  %v393_v9 = vunpack.i.h.bf16 %v391_v5  ;;  %v392_v10 = vunpack.i.l.bf16 %v391_v5 }
  0x7d   :  { %v98_v8 = vsel %vm97_vm0, %v382_v7, %v383_v6  ;;  %v84_v21 = vsel %vm83_vm2, %v392_v10, %v393_v9 }
  0x7e   :  { %113 = vmatpush.msra.mxu0 %v98_v8 }
  0x82   :  { %v386_v11 = vpop.permute.xlu0 %385  ;;  %v396_v12 = vpop.permute.xlu1 %395 }
  0x83   :  { %v388_v13 = vunpack.i.h.bf16 %v386_v11  ;;  %v387_v14 = vunpack.i.l.bf16 %v386_v11  ;;  %v398_v15 = vunpack.i.h.bf16 %v396_v12  ;;  %v397_v16 = vunpack.i.l.bf16 %v396_v12 }
  0x85   :  { %v91_v18 = vsel %vm90_vm1, %v387_v14, %v388_v13  ;;  %v77_v24 = vsel %vm76_vm3, %v397_v16, %v398_v15 }
  0x86   :  { %114 = vmatpush.msra.mxu0 %v91_v18 }
  0x88   :  { %115 = vmatpush.msra.mxu0 %v84_v21 }
  0x8a   :  { %116 = vmatpush.msra.mxu0 %v77_v24  ;;  %v411_v25 = vpop.permute.xlu0 %410 }
  0x8b   :  { %v413_v26 = vunpack.i.h.bf16 %v411_v25  ;;  %v412_v27 = vunpack.i.l.bf16 %v411_v25 }
  0x8c   :  { %117 = vmatpush.msra.mxu0 %v70_v28 }
  0x8d   :  { %v56_v30 = vsel %vm55_vm6, %v412_v27, %v413_v26 }
  0x8e   :  { %118 = vmatpush.msra.mxu0 %v63_v29 }
  0x90   :  { %119 = vmatpush.msra.mxu0 %v56_v30 }
  0x92   :  { %120 = vmatpush.msra.mxu0 %v47_v0 }
  0x93   :  { %363 = vmatmul.msk.f32.vlgmr.msra.gmra.mxu0 %vm101_vm7, %v100_v31 }
 0x110   :  { %v122_v36 = vpop.f32.mrf.mxu0 }
 0x111   :  { %v139_v37 = vmul.f32 %v364_v35, %v122_v36 }
 0x113   :  { %140 = vadd.xlane.f32.xlu1 %v139_v37  ;;  %v143_v38 = vmul.f32 %v139_v37, %v122_v36 }
 0x115   :  { %144 = vadd.xlane.f32.xlu2 %v143_v38 }
 0x186   :  { %v141_v40 = vpop.xlane.xlu1 %140 }
 0x187   :  { %v148_v41 = vmul.f32 0.00877193, %v141_v40 }
 0x188   :  { %v145_v42 = vpop.xlane.xlu2 %144 }
 0x189   :  { %v150_v43 = vmul.f32 %v148_v41, %v148_v41  ;;  %v149_v44 = vmul.f32 0.00877193, %v145_v42 }
 0x18b   :  { %v151_v45 = vsub.f32 %v149_v44, %v150_v43 }
 0x18d   :  { %v152_v46 = vmax.f32 %v151_v45, 0.0 }
 0x18f   :  { %v154_v47 = vadd.f32 1e-05, %v152_v46 }
 0x191   :  { %480 = vrsqrt.f32 %v154_v47  ;;  %vm161_vm8 = vweird.f32 %v154_v47 }
 0x197   :  { %v481_v48 = vpop.eup %480 }
 0x198   :  { %v156_v49 = vmul.f32 %v481_v48, %v154_v47  ;;  %vm162_vm0 = vweird.f32 %v481_v48 }
 0x199   :  { %vm163_vm9 = vmor %vm161_vm8, %vm162_vm0 }
 0x19a   :  { %v157_v50 = vmul.f32 %v481_v48, %v156_v49 }
 0x19c   :  { %v158_v51 = vmul.f32 0.5, %v157_v50 }
 0x19e   :  { %v159_v52 = vsub.f32 1.5, %v158_v51 }
 0x1a0   :  { %v160_v54 = vmul.f32 %v481_v48, %v159_v52 }
 0x1a2   :  { %v164_v55 = vsel %vm163_vm9, %v481_v48, %v160_v54 }
 0x1a3   :  { %v165_v56 = vmul.f32 %v164_v55, %v153_v53 }
 0x1a5   :  { %174 = vperm.xlu0 %414, %v165_v56   ;;  %v167_v57 = vmul.f32 %v165_v56, %v148_v41 }
 0x1a7   :  { %v168_v59 = vsub.f32 %v166_v58, %v167_v57 }
 0x1ad   :  { %180 = vperm.xlu0 %414, %v168_v59  }
 0x217   :  { %v175_v60 = vpop.permute.xlu0 %174 }
 0x218   :  { %v177_v61 = vmul.f32 %v175_v60, %v122_v36 }
 0x21f   :  { %v181_v62 = vpop.permute.xlu0 %180 }
 0x220   :  { %v183_v63 = vadd.f32 %v181_v62, %v177_v61 }
 0x222   :  { %v184_v0 = vmax.f32 %v183_v63, 0.0 }
 0x224   :  { %v185_v1 = vmul.f32 %v364_v35, %v184_v0  ;;  %v224_v35 = vld [vmem:[%s664_s5] sm:$0x3] }
 0x225   :  { %v223_v0 = vld [vmem:[%s661_s2] sm:$0x3] }
 0x226   :  { %v425_v2 = vpack.i.bf16 %v185_v1, %v545_v34 }
 0x228   :  { %426 = vrot.lane.b32.xlu1 %v425_v2, %s541_s17  ;;  %421 = vrot.lane.b32.xlu2 %v425_v2, %s538_s1 }
 0x229   :  { %416 = vrot.lane.b32.xlu0 %v425_v2, %s540_s16 }
 0x231   :  { %221 = vrot.lane.b32.xlu0 %v185_v1, %s537_s14 }
 0x239   :  { %431 = vrot.lane.b32.xlu0 %v425_v2, %s539_s15 }
 0x241   :  { %436 = vrot.lane.b32.xlu0 %v425_v2, %s542_s18 }
 0x249   :  { %441 = vrot.lane.b32.xlu0 %v425_v2, %s543_s0 }
 0x282   :  { %v422_v3 = vpop.permute.xlu2 %421 }
 0x283   :  { %v424_v4 = vunpack.i.h.bf16 %v422_v3  ;;  %v423_v5 = vunpack.i.l.bf16 %v422_v3 }
 0x285   :  { %v215_v11 = vsel %vm83_vm2, %v423_v5, %v424_v4  ;;  %vm300_vm2 = vcmask 1041408  }
 0x29a   :  { %v427_v6 = vpop.permute.xlu1 %426 }
 0x29b   :  { %v429_v7 = vunpack.i.h.bf16 %v427_v6  ;;  %v428_v8 = vunpack.i.l.bf16 %v427_v6  ;;  %v417_v9 = vpop.permute.xlu0 %416 }
 0x29c   :  { %v419_v10 = vunpack.i.h.bf16 %v417_v9  ;;  %v418_v15 = vunpack.i.l.bf16 %v417_v9 }
 0x29d   :  { %v210_v12 = vsel %vm76_vm3, %v428_v8, %v429_v7 }
 0x29e   :  { %v450_v13 = vpack.i.bf16 %v215_v11, %v419_v10  ;;  %v455_v14 = vpack.i.bf16 %v210_v12, %v424_v4  ;;  %v220_v17 = vsel %vm90_vm1, %v418_v15, %v419_v10  ;;  %vm260_vm1 = vcmask 56320  }
 0x2a0   :  { %451 = vrot.lane.b32.xlu1 %v450_v13, %s547_s3  ;;  %456 = vrot.lane.b32.xlu0 %v455_v14, %s547_s3 }
 0x2a3   :  { %v222_v16 = vpop.permute.xlu0 %221 }
 0x2a4   :  { %v445_v18 = vpack.i.bf16 %v220_v17, %v222_v16 }
 0x2a6   :  { %446 = vrot.lane.b32.xlu2 %v445_v18, %s547_s3 }
 0x2ab   :  { %v432_v19 = vpop.permute.xlu0 %431 }
 0x2ac   :  { %v434_v20 = vunpack.i.h.bf16 %v432_v19  ;;  %v433_v21 = vunpack.i.l.bf16 %v432_v19 }
 0x2ae   :  { %v205_v22 = vsel %vm69_vm4, %v433_v21, %v434_v20  ;;  %v316_v21 = vld [vmem:[%s665_s6] sm:$0x3]  ;;  %s353_s6 = sshll.u32 %s667_s8, 4  ;;  %s354_s6 = int_to_ptr.hbm [resolvable:$true] %s353_s6 }
 0x2af   :  { %v460_v23 = vpack.i.bf16 %v205_v22, %v429_v7 }
 0x2b1   :  { %461 = vrot.lane.b32.xlu2 %v460_v23, %s547_s3 }
 0x2b3   :  { %v437_v24 = vpop.permute.xlu0 %436 }
 0x2b4   :  { %v439_v25 = vunpack.i.h.bf16 %v437_v24  ;;  %v438_v26 = vunpack.i.l.bf16 %v437_v24 }
 0x2b6   :  { %v200_v27 = vsel %vm62_vm5, %v438_v26, %v439_v25  ;;  %v329_v26 = vld [vmem:[%s666_s7] sm:$0x3] }
 0x2b7   :  { %v465_v28 = vpack.i.bf16 %v200_v27, %v434_v20 }
 0x2b9   :  { %466 = vrot.lane.b32.xlu1 %v465_v28, %s547_s3 }
 0x2bb   :  { %v442_v29 = vpop.permute.xlu0 %441 }
 0x2bc   :  { %v444_v30 = vunpack.i.h.bf16 %v442_v29  ;;  %v443_v31 = vunpack.i.l.bf16 %v442_v29 }
 0x2be   :  { %v475_v32 = vpack.i.bf16 0.0, %v444_v30  ;;  %v195_v33 = vsel %vm55_vm6, %v443_v31, %v444_v30 }
 0x2bf   :  { %v470_v34 = vpack.i.bf16 %v195_v33, %v439_v25 }
 0x2c0   :  { %476 = vrot.lane.b32.xlu2 %v475_v32, %s547_s3 }
 0x2c1   :  { %471 = vrot.lane.b32.xlu0 %v470_v34, %s547_s3  ;;  %232 = vrot.lane.b32.xlu1 %v185_v1, %s547_s3 }
 0x2c9   :  { %227 = vperm.xlu0 %414, %v224_v35  }
 0x300   :  { %v447_v36 = vpop.permute.xlu2 %446 }
 0x301   :  { %v448_v37 = vunpack.i.l.bf16 %v447_v36  ;;  %v449_v40 = vunpack.i.h.bf16 %v447_v36 }
 0x303   :  { %287 = vmatpush.msra.mxu1 %v448_v37 }
 0x30b   :  { %v462_v44 = vpop.permute.xlu2 %461 }
 0x30c   :  { %v463_v48 = vunpack.i.l.bf16 %v462_v44  ;;  %v464_v51 = vunpack.i.h.bf16 %v462_v44 }
 0x312   :  { %v452_v38 = vpop.permute.xlu1 %451  ;;  %v457_v39 = vpop.permute.xlu0 %456 }
 0x313   :  { %v454_v41 = vunpack.i.h.bf16 %v452_v38  ;;  %v453_v42 = vunpack.i.l.bf16 %v452_v38  ;;  %v458_v43 = vunpack.i.l.bf16 %v457_v39  ;;  %v459_v45 = vunpack.i.h.bf16 %v457_v39 }
 0x315   :  { %v267_v46 = vsel %vm260_vm1, %v449_v40, %v453_v42  ;;  %v266_v47 = vsel %vm260_vm1, %v454_v41, %v458_v43  ;;  %v265_v49 = vsel %vm260_vm1, %v459_v45, %v463_v48 }
 0x316   :  { %288 = vmatpush.msra.mxu1 %v267_v46 }
 0x318   :  { %289 = vmatpush.msra.mxu1 %v266_v47 }
 0x31a   :  { %290 = vmatpush.msra.mxu1 %v265_v49  ;;  %v477_v54 = vpop.permute.xlu2 %476 }
 0x31b   :  { %v478_v59 = vunpack.i.l.bf16 %v477_v54  ;;  %v479_v62 = vunpack.i.h.bf16 %v477_v54 }
 0x32b   :  { %v467_v50 = vpop.permute.xlu1 %466 }
 0x32c   :  { %v468_v52 = vunpack.i.l.bf16 %v467_v50  ;;  %v469_v56 = vunpack.i.h.bf16 %v467_v50 }
 0x32e   :  { %v264_v53 = vsel %vm260_vm1, %v464_v51, %v468_v52 }
 0x32f   :  { %291 = vmatpush.msra.mxu1 %v264_v53 }
 0x333   :  { %v472_v55 = vpop.permute.xlu0 %471  ;;  %v233_v61 = vpop.permute.xlu1 %232 }
 0x334   :  { %v474_v57 = vunpack.i.h.bf16 %v472_v55  ;;  %v473_v58 = vunpack.i.l.bf16 %v472_v55  ;;  %v261_v1 = vsel %vm260_vm1, %v479_v62, %v233_v61 }
 0x336   :  { %v263_v60 = vsel %vm260_vm1, %v469_v56, %v473_v58  ;;  %v262_v63 = vsel %vm260_vm1, %v474_v57, %v478_v59 }
 0x337   :  { %292 = vmatpush.msra.mxu1 %v263_v60 }
 0x339   :  { %293 = vmatpush.msra.mxu1 %v262_v63 }
 0x33b   :  { %294 = vmatpush.msra.mxu1 %v261_v1  ;;  %v228_v2 = vpop.permute.xlu0 %227 }
 0x33c   :  { %365 = vmatmul.msk.f32.vlgmr.msra.gmra.mxu1 %vm101_vm7, %v223_v0 }
 0x3b9   :  { %v296_v3 = vpop.f32.mrf.mxu1 }
 0x3ba   :  { %v297_v4 = vadd.f32 %v296_v3, %v228_v2 }
 0x3bc   :  { %310 = vst [vmem:[#allocation6] sm:$0x3] %v297_v4  ;;  %v301_v5 = vsel %vm300_vm2, %v297_v4, 0.0  ;;  %v305_v6 = vmul.f32 %v297_v4, %v297_v4 }
 0x3bd   :  { %302 = vadd.xlane.f32.xlu2 %v301_v5 }
 0x3be   :  { %v306_v7 = vsel %vm300_vm2, %v305_v6, 0.0 }
 0x3bf   :  { %307 = vadd.xlane.f32.xlu1 %v306_v7 }
 0x3c3   :  { %v332_v29 = vld [vmem:[#allocation6] sm:$0x3] }
 0x430   :  { %v303_v8 = vpop.xlane.xlu2 %302 }
 0x431   :  { %v311_v9 = vmul.f32 0.0078125, %v303_v8 }
 0x432   :  { %v308_v10 = vpop.xlane.xlu1 %307 }
 0x433   :  { %v313_v11 = vmul.f32 %v311_v9, %v311_v9  ;;  %v312_v12 = vmul.f32 0.0078125, %v308_v10 }
 0x435   :  { %v314_v13 = vsub.f32 %v312_v12, %v313_v11 }
 0x437   :  { %v315_v14 = vmax.f32 %v314_v13, 0.0 }
 0x439   :  { %v317_v15 = vadd.f32 1e-05, %v315_v14 }
 0x43b   :  { %482 = vrsqrt.f32 %v317_v15  ;;  %vm324_vm4 = vweird.f32 %v317_v15 }
 0x441   :  { %v483_v16 = vpop.eup %482 }
 0x442   :  { %v319_v17 = vmul.f32 %v483_v16, %v317_v15  ;;  %vm325_vm3 = vweird.f32 %v483_v16 }
 0x443   :  { %vm326_vm5 = vmor %vm324_vm4, %vm325_vm3 }
 0x444   :  { %v320_v18 = vmul.f32 %v483_v16, %v319_v17 }
 0x446   :  { %v321_v19 = vmul.f32 0.5, %v320_v18 }
 0x448   :  { %v322_v20 = vsub.f32 1.5, %v321_v19 }
 0x44a   :  { %v323_v22 = vmul.f32 %v483_v16, %v322_v20 }
 0x44c   :  { %v327_v23 = vsel %vm326_vm5, %v483_v16, %v323_v22 }
 0x44d   :  { %v328_v24 = vmul.f32 %v327_v23, %v316_v21 }
 0x44f   :  { %335 = vperm.xlu0 %414, %v328_v24   ;;  %v330_v25 = vmul.f32 %v328_v24, %v311_v9 }
 0x451   :  { %v331_v27 = vsub.f32 %v329_v26, %v330_v25 }
 0x457   :  { %341 = vperm.xlu0 %414, %v331_v27  }
 0x4c1   :  { %v336_v28 = vpop.permute.xlu0 %335 }
 0x4c2   :  { %v338_v30 = vmul.f32 %v336_v28, %v332_v29 }
 0x4c9   :  { %v342_v31 = vpop.permute.xlu0 %341 }
 0x4ca   :  { %v344_v32 = vadd.f32 %v342_v31, %v338_v30 }
 0x4cc   :  { %345 = vst [vmem:[#allocation6] sm:$0x3] %v344_v32 }
 0x4cd   :  { %356 = dma.vmem_to_hbm [thread:$0]  %s352_s29, 32, %s354_s6, [#allocation5]  }
 0x4ce   :  { %534 = dma.done.wait [#allocation5], 32  }
 0x4cf   :  { %535 = vsyncadd [#allocation5], 4294967264 }
 0x4d0   :  { %361 = vsyncpa [#allocation4], 1 }
 0x4d1   :  { %362 = vsyncpa [#allocation5], 1 }

</bundles_post_ra>
